<compile_context>
chip_gen: v6e
topology: v6e:2x2x1
jax: 0.10.0
libtpu: 0.0.40
codegen_flags: <defaults>
</compile_context>

<pallas_src>
import functools

import jax
import jax.numpy as jnp
from jax.experimental import pallas as pl
from jax.experimental.pallas import tpu as pltpu


def _round_up(n, m):
    return ((n + m - 1) // m) * m


def _cdiv(a, b):
    return (a + b - 1) // b


@functools.lru_cache(maxsize=1)
def _vmem_capacity_bytes():
    try:
        return int(pltpu.get_tpu_info().vmem_capacity_bytes)
    except Exception:
        return 64 << 20  # conservative default (v7x per-TC)


@functools.lru_cache(maxsize=1)
def _gelu_compute_dtype():
    """bf16 GELU on chips with bf16 VPU/EUP (v6e/v7x); f32 on v5e and older."""
    try:
        kind = jax.devices()[0].device_kind.lower()
    except Exception:
        return jnp.float32
    if any(tag in kind for tag in ("v2", "v3", "v4", "v5")):
        return jnp.float32
    return jnp.bfloat16


def _embedfc_kernel(x_ref, w1_ref, b1_ref, w2_ref, b2_ref, o_ref, *, gelu_dtype):
    # One batch tile per grid step; weights/biases are VMEM-resident across steps.
    x = x_ref[...]                                             # already bf16
    h = jnp.dot(x, w1_ref[...], preferred_element_type=jnp.float32) + b1_ref[...]
    # tanh-approximation GELU, exactly as in the PyTorch module.
    hg = h.astype(gelu_dtype)
    g = 0.5 * hg * (1.0 + jnp.tanh(0.79788456 * (hg + 0.044715 * hg * hg * hg)))
    out = jnp.dot(g.astype(jnp.bfloat16), w2_ref[...],
                  preferred_element_type=jnp.float32) + b2_ref[...]
    o_ref[...] = out.astype(o_ref.dtype)


def prepare_embedfc_params(w1, b1, w2, b2):
    """One-time weight prep (pad emb dim to 128-multiple, cast to bf16/f32).

    Hoisted out of the jitted forward so the pad/cast HBM traffic does not rerun
    on every call. Zero padding is exact: padded W1/b1 columns give h==0,
    GELU(0)==0, and padded W2 rows/cols + zero b2 padding contribute nothing to
    the valid output slice.
    """
    input_dim, emb_dim = w1.shape
    emb_p = _round_up(emb_dim, 128)
    pe = emb_p - emb_dim
    w1_p = jnp.pad(jnp.asarray(w1, jnp.bfloat16), ((0, 0), (0, pe)))
    b1_p = jnp.pad(jnp.asarray(b1, jnp.float32).reshape(1, emb_dim), ((0, 0), (0, pe)))
    w2_p = jnp.pad(jnp.asarray(w2, jnp.bfloat16), ((0, pe), (0, pe)))
    b2_p = jnp.pad(jnp.asarray(b2, jnp.float32).reshape(1, emb_dim), ((0, 0), (0, pe)))
    return w1_p, b1_p, w2_p, b2_p


@functools.partial(jax.jit, static_argnames=("input_dim", "emb_dim", "tile_b"))
def embed_fc(x, w1_p, b1_p, w2_p, b2_p, *, input_dim, emb_dim, tile_b=1024):
    """Pallas EmbedFC.forward: GELU(x.view(-1, D) @ W1 + b1) @ W2 + b2.

    Expects pre-padded params from prepare_embedfc_params().
    """
    x2 = x.reshape(-1, input_dim)                              # x.view(-1, input_dim)
    B = x2.shape[0]
    emb_p = w1_p.shape[1]
    out_dtype = x2.dtype
    out_bytes = jnp.dtype(out_dtype).itemsize

    # Balanced, sublane-aligned batch tile: pad is bounded by <8 rows per tile.
    n_tiles = max(1, _cdiv(B, tile_b))
    tb = _round_up(_cdiv(B, n_tiles), 8)

    # Generation-aware VMEM budget including h/g intermediates; shrink tb to fit.
    vmem_cap = _vmem_capacity_bytes()
    budget_cap = min(int(0.75 * vmem_cap), 100 << 20)          # ~48 MiB v7x, ~96 MiB v5e/v6e

    weight_bytes = (w1_p.size + w2_p.size) * 2 + (b1_p.size + b2_p.size) * 4

    def footprint(tb_):
        io = 2 * tb_ * (input_dim * 2 + emb_p * out_bytes)     # dbl-buffered bf16 x + out
        inter = tb_ * emb_p * (4 + 2)                          # f32 h + bf16 g
        return weight_bytes + io + inter

    while tb > 8 and footprint(tb) > budget_cap:
        tb = _round_up(tb // 2, 8)
    b_p = _round_up(B, tb)

    vmem_limit = int(min(max(footprint(tb) + (8 << 20), 32 << 20), budget_cap))

    # bf16 cast fused into the batch pad (K dim is NOT padded: full-dim block).
    x_p = jnp.pad(jnp.asarray(x2, jnp.bfloat16), ((0, b_p - B), (0, 0)))

    kernel = functools.partial(_embedfc_kernel, gelu_dtype=_gelu_compute_dtype())

    # TODO(synk): for very large emb_dim (>= ~1024 on v7x, ~2048 on v5e/v6e) replace
    # W2 residency with an extra "arbitrary" K/N grid axis + f32 accumulator scratch.
    out_p = pl.pallas_call(
        kernel,
        out_shape=jax.ShapeDtypeStruct((b_p, emb_p), out_dtype),
        grid=(b_p // tb,),
        in_specs=[
            pl.BlockSpec((tb, input_dim), lambda i: (i, 0)),   # x: tiled over batch, full K
            pl.BlockSpec((input_dim, emb_p), lambda i: (0, 0)),  # W1: VMEM-resident
            pl.BlockSpec((1, emb_p), lambda i: (0, 0)),        # b1: VMEM-resident
            pl.BlockSpec((emb_p, emb_p), lambda i: (0, 0)),    # W2: VMEM-resident
            pl.BlockSpec((1, emb_p), lambda i: (0, 0)),        # b2: VMEM-resident
        ],
        out_specs=pl.BlockSpec((tb, emb_p), lambda i: (i, 0)),
        compiler_params=pltpu.CompilerParams(
            dimension_semantics=("parallel",),                 # 2x TCs on v7x
            vmem_limit_bytes=vmem_limit,
        ),
    )(x_p, w1_p, b1_p, w2_p, b2_p)

    return out_p[:B, :emb_dim]


def init_embedfc_params(key, input_dim, emb_dim, dtype=jnp.float32):
    """Deterministic init matching nn.Linear shapes (weights stored (in, out))."""
    k1, k2, k3, k4 = jax.random.split(key, 4)
    lim1 = 1.0 / jnp.sqrt(input_dim)
    lim2 = 1.0 / jnp.sqrt(emb_dim)
    w1 = jax.random.uniform(k1, (input_dim, emb_dim), dtype, -lim1, lim1)
    b1 = jax.random.uniform(k2, (1, emb_dim), dtype, -lim1, lim1)
    w2 = jax.random.uniform(k3, (emb_dim, emb_dim), dtype, -lim2, lim2)
    b2 = jax.random.uniform(k4, (1, emb_dim), dtype, -lim2, lim2)
    return w1, b1, w2, b2


def _reference(x, w1, b1, w2, b2, input_dim):
    x2 = x.reshape(-1, input_dim)
    h = x2 @ w1 + b1
    g = 0.5 * h * (1.0 + jnp.tanh(0.79788456 * (h + 0.044715 * h * h * h)))
    return g @ w2 + b2


if __name__ == "__main__":
    input_dim, emb_dim = 16, 32

    key = jax.random.PRNGKey(0)
    kx, kp = jax.random.split(key)
    # Extra leading dims exercise x.view(-1, input_dim): (2, 4, 16) -> (8, 16).
    x = jax.random.normal(kx, (2, 4, input_dim), jnp.float32)
    w1, b1, w2, b2 = init_embedfc_params(kp, input_dim, emb_dim)

    # One-time weight prep (pad + cast), outside the jitted forward.
    w1_p, b1_p, w2_p, b2_p = prepare_embedfc_params(w1, b1, w2, b2)

    out = embed_fc(x, w1_p, b1_p, w2_p, b2_p, input_dim=input_dim, emb_dim=emb_dim)
    out = jax.block_until_ready(out)

    ref = _reference(x, w1, b1, w2, b2, input_dim)
    assert out.shape == (8, emb_dim)
    # bf16 MXU operands (f32 accumulation) vs pure-f32 reference -> loosened tolerance.
    err = float(jnp.max(jnp.abs(out - ref)))
    assert jnp.allclose(out, ref, atol=5e-2, rtol=5e-2), err

    print("KERNEL_OK")
</pallas_src>

<mosaic_0001>
module attributes {stable_mosaic.version = 11 : i64} {
  func.func @_embedfc_kernel(%arg0: i32, %arg1: memref<8x16xbf16, #tpu.memory_space<vmem>>, %arg2: memref<16x128xbf16, #tpu.memory_space<vmem>>, %arg3: memref<1x128xf32, #tpu.memory_space<vmem>>, %arg4: memref<128x128xbf16, #tpu.memory_space<vmem>>, %arg5: memref<1x128xf32, #tpu.memory_space<vmem>>, %arg6: memref<8x128xf32, #tpu.memory_space<vmem>>) attributes {dimension_semantics = [#tpu.dimension_semantics<parallel>], iteration_bounds = array<i64: 1>, scalar_prefetch = 0 : i64, scratch_operands = 0 : i64, tpu.core_type = #tpu.core_type<tc>, window_params = [{transform_indices = @transform_0, window_bounds = array<i64: 8, 16>}, {pipeline_mode = #tpu.pipeline_mode<synchronous>, transform_indices = @transform_1, window_bounds = array<i64: 16, 128>}, {pipeline_mode = #tpu.pipeline_mode<synchronous>, transform_indices = @transform_2, window_bounds = array<i64: 1, 128>}, {pipeline_mode = #tpu.pipeline_mode<synchronous>, transform_indices = @transform_3, window_bounds = array<i64: 128, 128>}, {pipeline_mode = #tpu.pipeline_mode<synchronous>, transform_indices = @transform_4, window_bounds = array<i64: 1, 128>}, {transform_indices = @transform_5, window_bounds = array<i64: 8, 128>}]} {
    %c0 = arith.constant 0 : index
    %c0_0 = arith.constant 0 : index
    %0 = vector.load %arg1[%c0, %c0_0] : memref<8x16xbf16, #tpu.memory_space<vmem>>, vector<8x16xbf16>
    %c0_1 = arith.constant 0 : index
    %c0_2 = arith.constant 0 : index
    %1 = vector.load %arg2[%c0_1, %c0_2] : memref<16x128xbf16, #tpu.memory_space<vmem>>, vector<16x128xbf16>
    %cst = arith.constant dense<0.000000e+00> : vector<8x128xf32>
    %2 = tpu.matmul %0, %1, %cst {dimension_numbers = #tpu.dot_dimension_numbers<[1], [0], [0], [1], [0, 0, 1, 1], [], []>} : vector<8x16xbf16>, vector<16x128xbf16>, vector<8x128xf32> -> vector<8x128xf32>
    %c0_3 = arith.constant 0 : index
    %c0_4 = arith.constant 0 : index
    %3 = vector.load %arg3[%c0_3, %c0_4] : memref<1x128xf32, #tpu.memory_space<vmem>>, vector<1x128xf32>
    %4 = vector.broadcast %3 : vector<1x128xf32> to vector<8x128xf32>
    %5 = arith.addf %2, %4 : vector<8x128xf32>
    %6 = arith.truncf %5 : vector<8x128xf32> to vector<8x128xbf16>
    %cst_5 = arith.constant 5.000000e-01 : bf16
    %7 = vector.broadcast %cst_5 : bf16 to vector<8x128xbf16>
    %8 = arith.mulf %7, %6 : vector<8x128xbf16>
    %cst_6 = arith.constant 4.467770e-02 : bf16
    %9 = vector.broadcast %cst_6 : bf16 to vector<8x128xbf16>
    %10 = arith.mulf %9, %6 : vector<8x128xbf16>
    %11 = arith.mulf %10, %6 : vector<8x128xbf16>
    %12 = arith.mulf %11, %6 : vector<8x128xbf16>
    %13 = arith.addf %6, %12 : vector<8x128xbf16>
    %cst_7 = arith.constant 7.968750e-01 : bf16
    %14 = vector.broadcast %cst_7 : bf16 to vector<8x128xbf16>
    %15 = arith.mulf %14, %13 : vector<8x128xbf16>
    %16 = math.tanh %15 : vector<8x128xbf16>
    %cst_8 = arith.constant 1.000000e+00 : bf16
    %17 = vector.broadcast %cst_8 : bf16 to vector<8x128xbf16>
    %18 = arith.addf %17, %16 : vector<8x128xbf16>
    %19 = arith.mulf %8, %18 : vector<8x128xbf16>
    %c0_9 = arith.constant 0 : index
    %c0_10 = arith.constant 0 : index
    %20 = vector.load %arg4[%c0_9, %c0_10] : memref<128x128xbf16, #tpu.memory_space<vmem>>, vector<128x128xbf16>
    %cst_11 = arith.constant dense<0.000000e+00> : vector<8x128xf32>
    %21 = tpu.matmul %19, %20, %cst_11 {dimension_numbers = #tpu.dot_dimension_numbers<[1], [0], [0], [1], [0, 0, 1, 1], [], []>} : vector<8x128xbf16>, vector<128x128xbf16>, vector<8x128xf32> -> vector<8x128xf32>
    %c0_12 = arith.constant 0 : index
    %c0_13 = arith.constant 0 : index
    %22 = vector.load %arg5[%c0_12, %c0_13] : memref<1x128xf32, #tpu.memory_space<vmem>>, vector<1x128xf32>
    %23 = vector.broadcast %22 : vector<1x128xf32> to vector<8x128xf32>
    %24 = arith.addf %21, %23 : vector<8x128xf32>
    %c0_14 = arith.constant 0 : index
    %c0_15 = arith.constant 0 : index
    %25 = vector.load %arg6[%c0_14, %c0_15] : memref<8x128xf32, #tpu.memory_space<vmem>>, vector<8x128xf32>
    tpu.vector_store %arg6[%c0_14, %c0_15], %24 {strides = array<i32>} : memref<8x128xf32, #tpu.memory_space<vmem>>, vector<8x128xf32>,
    return
  }
  func.func @transform_0(%arg0: i32) -> (i32, i32) {
    %c0_i32 = arith.constant 0 : i32
    %c0_i32_0 = arith.constant 0 : i32
    return %arg0, %c0_i32 : i32, i32
  }
  func.func @transform_1(%arg0: i32) -> (i32, i32) {
    %c0_i32 = arith.constant 0 : i32
    %c0_i32_0 = arith.constant 0 : i32
    %c0_i32_1 = arith.constant 0 : i32
    return %c0_i32, %c0_i32_0 : i32, i32
  }
  func.func @transform_2(%arg0: i32) -> (i32, i32) {
    %c0_i32 = arith.constant 0 : i32
    %c0_i32_0 = arith.constant 0 : i32
    %c0_i32_1 = arith.constant 0 : i32
    return %c0_i32, %c0_i32_0 : i32, i32
  }
  func.func @transform_3(%arg0: i32) -> (i32, i32) {
    %c0_i32 = arith.constant 0 : i32
    %c0_i32_0 = arith.constant 0 : i32
    %c0_i32_1 = arith.constant 0 : i32
    return %c0_i32, %c0_i32_0 : i32, i32
  }
  func.func @transform_4(%arg0: i32) -> (i32, i32) {
    %c0_i32 = arith.constant 0 : i32
    %c0_i32_0 = arith.constant 0 : i32
    %c0_i32_1 = arith.constant 0 : i32
    return %c0_i32, %c0_i32_0 : i32, i32
  }
  func.func @transform_5(%arg0: i32) -> (i32, i32) {
    %c0_i32 = arith.constant 0 : i32
    %c0_i32_0 = arith.constant 0 : i32
    return %arg0, %c0_i32 : i32, i32
  }
}

</mosaic_0001>

<bundles_post_ra>
// kernel: embed_fc.1
= control target key start
LH: loop header
LB: loop body
LE: loop exit
PB: predicated region body
PF: predicated region fallthrough
CT: control target
= control target key end

     0   :  { %10 = vsyncpa [#allocation3], 0  ;;  %s401_s0 = inlined_call_operand.vmem [shape: bf16[8,16], index: 0, kind: input, shape index: {}]   ;;  %s402_s1 = inlined_call_operand.vmem [shape: bf16[16,128], index: 1, kind: input, shape index: {}]   ;;  %s403_s2 = inlined_call_operand.vmem [shape: f32[1,128], index: 2, kind: input, shape index: {}]   ;;  %s404_s3 = inlined_call_operand.hbm [shape: bf16[128,128], index: 3, kind: input, shape index: {}]   ;;  %s405_s4 = inlined_call_operand.vmem [shape: f32[1,128], index: 4, kind: input, shape index: {}]   ;;  %s406_s5 = inlined_call_operand.hbm [shape: f32[8,128], index: 5, kind: output, shape index: {}]  }
   0x1   :  { %11 = vsyncpa [#allocation4], 0  ;;  %s347_s18 = smov [#allocation2]  }
   0x2   :  { %s23_s19 = sshll.u32 %s347_s18, 4  ;;  %s24_s19 = int_to_ptr.vmem [resolvable:$true] %s23_s19 }
   0x3   :  { %s311_s20 = scalar_lea.vmem %s24_s19, 1024  ;;  %p316_p1 = scmp.lt.s32.totalorder %s24_s19, %s24_s19 }
   0x4   :  { %p312_p0 = scmp.ne.s32.totalorder %s24_s19, %s311_s20  ;;  %p317_p2 = scmp.lt.s32.totalorder %s311_s20, %s311_s20 }
   0x6   :  { %p318_p3 = por %p317_p2, %p316_p1 }
   0x8   :  { %p319_p4 = pnand %p318_p3, %p312_p0 }
   0xa   :  { %322 = shalt.err (!%p319_p4)
}
   0xb   :  { %s348_s21 = smov 64   ;;  %s349_s22 = smov 4  }
   0xc   :  { %29 = dma.hbm_to_vmem [thread:$0]  %s404_s3, 1024, %s24_s19, [#allocation3], %s348_s21, %s348_s21, %s349_s22  }
   0xd   :  { %343 = dma.done.wait [#allocation3], 1024  }
   0xe   :  { %344 = vsyncadd [#allocation3], 4294966272  ;;  %v350_v0 = vmov 0.0   ;;  %vm351_vm0 = vmmov 0   ;;  %v292_v1 = vld [vmem:[%s402_s1] sm:$0xff]   ;;  %vm56_vm1 = vcmask 130048  }
   0xf   :  { %260 = vmatprep.subr.bf16.mxu0 %v350_v0  ;;  %262 = vmatprep.mubr.msk.bf16.mxu0 %vm351_vm0, %v350_v0  ;;  %v40_v2 = vld [vmem:[%s401_s0] sm:$0xf]  ;;  %v293_v3 = vld [vmem:[#allocation2 + $0x38] sm:$0xff]   ;;  %v294_v4 = vld [vmem:[#allocation2 + $0x30] sm:$0xff]  }
  0x10   :  { %266 = vmatprep.subr.bf16.mxu1 %v350_v0  ;;  %282 = vmatprep.mubr.msk.bf16.mxu1 %vm351_vm0, %v350_v0  ;;  %v295_v5 = vld [vmem:[#allocation2 + $0x28] sm:$0xff]   ;;  %v296_v6 = vld [vmem:[#allocation2 + $0x20] sm:$0xff]   ;;  %v297_v7 = vld [vmem:[#allocation2 + $0x18] sm:$0xff]  }
  0x11   :  { %261 = vmatpush3.bf16.msra.mxu0 %v292_v1  ;;  %267 = vmatpush3.bf16.msra.mxu1 %v293_v3  ;;  %v298_v8 = vld [vmem:[#allocation2 + $0x10] sm:$0xff]   ;;  %v299_v9 = vld [vmem:[#allocation2 + $0x8] sm:$0xff]   ;;  %v300_v10 = vld [vmem:[#allocation2] sm:$0xff]  }
  0x12   :  { %268 = vmatprep.subr.bf16.mxu1 %v350_v0  ;;  %v237_v11 = vld [vmem:[%s403_s2] ss:$0 sm:$0xff]  ;;  %s352_s2 = smov [#allocation5]  }
  0x13   :  { %v240_v27 = vld [vmem:[%s405_s4] ss:$0 sm:$0xff]  ;;  %s228_s30 = sshll.u32 %s352_s2, 4  ;;  %s229_s30 = int_to_ptr.vmem [resolvable:$true] %s228_s30 }
  0x14   :  { %263 = vmatmul.mubr.msk.bf16.vlgmr.msra.gmra.mxu0 %vm56_vm1, %v40_v2  ;;  %s323_s6 = scalar_lea.vmem %s229_s30, 128  ;;  %p328_p6 = scmp.lt.s32.totalorder %s229_s30, %s229_s30 }
  0x15   :  { %269 = vmatpush3.bf16.msra.mxu1 %v294_v4  ;;  %p324_p5 = scmp.ne.s32.totalorder %s229_s30, %s323_s6  ;;  %p329_p7 = scmp.lt.s32.totalorder %s323_s6, %s323_s6 }
  0x16   :  { %270 = vmatprep.subr.bf16.mxu1 %v350_v0 }
  0x17   :  { %p330_p8 = por %p329_p7, %p328_p6 }
  0x19   :  { %271 = vmatpush3.bf16.msra.mxu1 %v295_v5  ;;  %p331_p9 = pnand %p330_p8, %p324_p5 }
  0x1a   :  { %272 = vmatprep.subr.bf16.mxu1 %v350_v0 }
  0x1d   :  { %273 = vmatpush3.bf16.msra.mxu1 %v296_v6 }
  0x1e   :  { %274 = vmatprep.subr.bf16.mxu1 %v350_v0 }
  0x21   :  { %275 = vmatpush3.bf16.msra.mxu1 %v297_v7 }
  0x22   :  { %276 = vmatprep.subr.bf16.mxu1 %v350_v0 }
  0x25   :  { %277 = vmatpush3.bf16.msra.mxu1 %v298_v8 }
  0x26   :  { %278 = vmatprep.subr.bf16.mxu1 %v350_v0 }
  0x29   :  { %279 = vmatpush3.bf16.msra.mxu1 %v299_v9 }
  0x2a   :  { %280 = vmatprep.subr.bf16.mxu1 %v350_v0 }
  0x2d   :  { %281 = vmatpush3.bf16.msra.mxu1 %v300_v10 }
  0xd4   :  { %v94_v12 = vpop.f32.mrf.mxu0 }
  0xd5   :  { %v95_v13 = vadd.f32 %v237_v11, %v94_v12 }
  0xd6   :  { %v264_v14 = vpop.f32.mrf.mxu0 }
  0xd7   :  { %v100_v15 = vpack.c.bf16 %v95_v13, %v95_v13 }
  0xd8   :  { %v97_v16 = vpop.f32.mrf.mxu0 }
  0xd9   :  { %v102_v17 = vmul.bf16 1027030327, %v100_v15  ;;  %v101_v24 = vmul.bf16 1056980736, %v100_v15 }
  0xda   :  { %v265_v18 = vpop.f32.mrf.mxu0 }
  0xdb   :  { %v103_v19 = vmul.bf16 %v102_v17, %v100_v15 }
  0xdd   :  { %v104_v20 = vmul.bf16 %v103_v19, %v100_v15 }
  0xdf   :  { %v105_v21 = vadd.bf16 %v104_v20, %v100_v15 }
  0xe1   :  { %v106_v22 = vmul.bf16 1061961548, %v105_v21 }
  0xe3   :  { %301 = vtanh.bf16 %v106_v22 }
  0xf1   :  { %v302_v23 = vpop.eup %301 }
  0xf2   :  { %v108_v25 = vadd.bf16 1065369472, %v302_v23 }
  0xf4   :  { %v109_v26 = vmul.bf16 %v108_v25, %v101_v24 }
  0xf6   :  { %283 = vmatmul.mubr.bf16.vlgmr.msra.gmra.mxu1 %v109_v26 }
 0x1b6   :  { %v215_v28 = vpop.f32.mrf.mxu1 }
 0x1b7   :  { %v216_v29 = vadd.f32 %v240_v27, %v215_v28 }
 0x1b8   :  { %v284_v30 = vpop.f32.mrf.mxu1 }
 0x1b9   :  { %221 = vst [vmem:[#allocation5] sm:$0xff] %v216_v29 }
 0x1ba   :  { %v218_v31 = vpop.f32.mrf.mxu1 }
 0x1bb   :  { %334 = shalt.err (!%p331_p9)
}
 0x1bc   :  { %231 = dma.vmem_to_hbm [thread:$0]  %s229_s30, 128, %s406_s5, [#allocation4]   ;;  %v285_v32 = vpop.f32.mrf.mxu1 }
 0x1bd   :  { %345 = dma.done.wait [#allocation4], 128  }
 0x1be   :  { %346 = vsyncadd [#allocation4], 4294967168 }
 0x1bf   :  { %235 = vsyncpa [#allocation3], 1 }
 0x1c0   :  { %236 = vsyncpa [#allocation4], 1 }

</bundles_post_ra>
